<compile_context>
chip_gen: v7x
topology: tpu7x:2x2x1
jax: 0.10.0
libtpu: 0.0.40
codegen_flags: <defaults>
</compile_context>

<pallas_src>
import functools

import jax
import jax.numpy as jnp
import numpy as np
from jax.experimental import pallas as pl
from jax.experimental.pallas import tpu as pltpu


# ----------------------------------------------------------------------------
# Gaussian kernel construction (identical to the PyTorch module).
# ----------------------------------------------------------------------------
def gaussian_kernel(kernel_size=7, sig=1.0):
    center = kernel_size // 2
    x_axis = np.linspace(0, kernel_size - 1, kernel_size) - center
    y_axis = np.linspace(0, kernel_size - 1, kernel_size) - center
    xx, yy = np.meshgrid(x_axis, y_axis)
    kernel = np.exp(-0.5 * (np.square(xx) + np.square(yy)) / np.square(sig)) / (
        np.sqrt(2 * np.pi) * sig)
    return kernel


def _separable_gaussian(kernel_size, sig):
    """1-D factors gy, gx with outer(gy, gx) == gaussian_kernel(K, sig)."""
    center = kernel_size // 2
    ax = np.linspace(0, kernel_size - 1, kernel_size) - center
    gy = np.exp(-0.5 * np.square(ax) / np.square(sig)) / (np.sqrt(2 * np.pi) * sig)
    gx = np.exp(-0.5 * np.square(ax) / np.square(sig))
    return gy, gx


# ----------------------------------------------------------------------------
# Kernel body: one (batch item, h-tile) grid step.
# ----------------------------------------------------------------------------
def _l_spa_kernel(org_m_ref, enh_m_ref, org_h_ref, enh_h_ref, out_ref, diff_ref,
                  *, gy, gx, K, TH, HB):
    C, _, W = org_m_ref.shape
    Wp = W - K + 1      # width after KxK Gaussian conv (padding=0)
    Wo = Wp - 2         # width after 3x3 directional conv (padding=0)
    Hv = TH + 2         # pooled rows needed to emit TH output rows

    # diff = org - enhance, written once into a persistent VMEM scratch
    # (main rows + halo rows), so the vertical taps below are addressed ref
    # loads rather than value-level sublane-shifted slices.
    diff_ref[:, :TH, :] = (org_m_ref[...].astype(jnp.float32)
                           - enh_m_ref[...].astype(jnp.float32))
    diff_ref[:, TH:, :] = (org_h_ref[...].astype(jnp.float32)
                           - enh_h_ref[...].astype(jnp.float32))

    # Separable Gaussian pool.  Vertical (sublane) pass: K weighted windows.
    tmp = float(gy[0]) * diff_ref[:, 0:Hv, :]
    for i in range(1, K):
        tmp = tmp + float(gy[i]) * diff_ref[:, i:i + Hv, :]

    # Horizontal (lane) pass: K weighted column windows.
    # TODO(synk): on v7x move these taps to the idle MXU as a banded
    # (Wtile + K - 1, 128) matmul per 128-column output tile.
    pooled = float(gx[0]) * tmp[:, :, 0:Wp]
    for j in range(1, K):
        pooled = pooled + float(gx[j]) * tmp[:, :, j:j + Wp]

    # Directional 3x3 kernels via shared first differences: left/right share
    # dx and up/down share dy (the sign difference vanishes under the square).
    dx = pooled[:, 1:Hv - 1, 1:Wp] - pooled[:, 1:Hv - 1, 0:Wp - 1]   # (C, TH, Wp-1)
    dy = pooled[:, 1:Hv, 1:Wp - 1] - pooled[:, 0:Hv - 1, 1:Wp - 1]   # (C, TH+1, Wo)
    E = dx[:, :, 0:Wo] * dx[:, :, 0:Wo]                  # left
    E = E + dx[:, :, 1:Wo + 1] * dx[:, :, 1:Wo + 1]      # right
    E = E + dy[:, 0:TH, :] * dy[:, 0:TH, :]              # up
    E = E + dy[:, 1:TH + 1, :] * dy[:, 1:TH + 1, :]      # down

    out_ref[...] = E.astype(out_ref.dtype)


# ----------------------------------------------------------------------------
# Tiling heuristics.
# ----------------------------------------------------------------------------
def _round_up(x, m):
    return ((x + m - 1) // m) * m


def _tile_defaults():
    """(H-tile row target, VMEM ceiling) per TPU generation."""
    try:
        kind = jax.devices()[0].device_kind.lower()
    except Exception:  # pragma: no cover - defensive
        kind = ""
    if ("v4" in kind) or ("v5" in kind) or ("v6" in kind):
        return 256, 100 * (1 << 20)   # 128 MiB physical VMEM
    return 128, 56 * (1 << 20)        # v7x (64 MiB physical) / unknown: conservative


def _step_vmem_bytes(C, TH, HB, W, Wo):
    """Rough per-grid-step VMEM working set (f32)."""
    main = 2 * 2 * C * TH * W          # org/enh main blocks, double buffered
    halo = 2 * 2 * C * HB * W          # org/enh halo blocks, double buffered
    out = 2 * C * TH * Wo              # output block, double buffered
    scratch = C * (TH + HB) * W        # diff scratch
    temps = 3 * C * (TH + 2) * W       # tmp / pooled / E-style live values
    return 4 * (main + halo + out + scratch + temps)


def _pick_tiles(Ho, K, th_budget):
    """Choose (HB, TH, pad_h, Ho_work).

    TH is a multiple of HB.  A ragged last h-tile is allowed only when the
    valid rows of that tile never read the (clamped) halo block, i.e.
    TH - (Ho % TH) >= K + 1; otherwise fall back to a small H pad.
    """
    HB = _round_up(K + 1, 8)

    def ok(th, ho):
        r = ho % th
        return r == 0 or th - r >= K + 1

    th0 = max(HB, (min(th_budget, _round_up(Ho, HB)) // HB) * HB)
    for th in range(th0, HB - 1, -HB):
        if ok(th, Ho):
            return HB, th, 0, Ho
    # Rare fallback: pad Ho up to a multiple of HB; then any TH is safe.
    pad = _round_up(Ho, HB) - Ho
    return HB, th0, pad, Ho + pad


# ----------------------------------------------------------------------------
# Wrapper.
# ----------------------------------------------------------------------------
def l_spa_pallas(enhance, org, pool_kernel_size, *, th_target=None):
    """enhance, org: (B, 3, H, W) float32.  Returns E: (B, 3, H-K-1, W-K-1)."""
    B, C, H, W = org.shape
    assert enhance.shape == org.shape
    assert C == 3, "L_spa kernels are expanded to 3 channels (groups=3)"
    K = int(pool_kernel_size)
    Ho, Wo = H - K - 1, W - K - 1
    assert Ho >= 1 and Wo >= 1, "image too small for the chosen pool kernel"

    default_th, vmem_cap = _tile_defaults()
    if th_target is None:
        th_target = default_th

    # Shrink the tile target until the per-step working set fits the budget.
    HB = _round_up(K + 1, 8)
    th_budget = max(HB, (th_target // HB) * HB)
    while th_budget > HB and _step_vmem_bytes(C, th_budget, HB, W, Wo) > int(0.6 * vmem_cap):
        th_budget -= HB

    HB, TH, pad_h, Ho_w = _pick_tiles(Ho, K, th_budget)
    H_work = Ho_w + K + 1

    if pad_h:
        # TODO(synk): rare fallback (awkward Ho); costs one extra HBM copy of
        # the inputs.  Could be removed with pl.Element-style halo index maps.
        padding = ((0, 0), (0, 0), (0, H_work - H), (0, 0))
        org = jnp.pad(org, padding)
        enhance = jnp.pad(enhance, padding)

    nh = (Ho_w + TH - 1) // TH
    th_per_hb = TH // HB
    max_hb_idx = (H_work - 1) // HB   # clamp keeps the halo block index valid

    gy, gx = _separable_gaussian(K, K / 4.0)
    kernel = functools.partial(_l_spa_kernel, gy=gy, gx=gx, K=K, TH=TH, HB=HB)

    main_spec = pl.BlockSpec((None, C, TH, W), lambda b, h: (b, 0, h, 0))
    halo_spec = pl.BlockSpec(
        (None, C, HB, W),
        lambda b, h: (b, 0, jnp.minimum((h + 1) * th_per_hb, max_hb_idx), 0))
    out_spec = pl.BlockSpec((None, C, TH, Wo), lambda b, h: (b, 0, h, 0))

    step_bytes = _step_vmem_bytes(C, TH, HB, W, Wo)
    compiler_kwargs = dict(dimension_semantics=("parallel", "parallel"))
    if step_bytes > 24 * (1 << 20):
        compiler_kwargs["vmem_limit_bytes"] = int(
            min(max(int(1.5 * step_bytes), 32 * (1 << 20)), vmem_cap))

    cost = pl.CostEstimate(
        flops=int(2 * (2 * K + 8) * B * C * Ho * Wo),
        transcendentals=0,
        bytes_accessed=int(4 * (2 * B * C * H * W + B * C * Ho * Wo)))

    out = pl.pallas_call(
        kernel,
        out_shape=jax.ShapeDtypeStruct((B, C, Ho_w, Wo), jnp.float32),
        grid=(B, nh),
        in_specs=[main_spec, main_spec, halo_spec, halo_spec],
        out_specs=out_spec,
        scratch_shapes=[pltpu.VMEM((C, TH + HB, W), jnp.float32)],
        compiler_params=pltpu.CompilerParams(**compiler_kwargs),
        cost_estimate=cost,
    )(org, enhance, org, enhance)

    if pad_h:
        out = out[:, :, :Ho, :]
    return out


# ----------------------------------------------------------------------------
# Plain numpy reference replicating the PyTorch forward semantics.
# ----------------------------------------------------------------------------
def _reference_numpy(enh, org, pool_kernel_size):
    enh = np.asarray(enh, np.float32)
    org = np.asarray(org, np.float32)
    B, C, H, W = org.shape
    K = int(pool_kernel_size)
    g = gaussian_kernel(K, K / 4.0).astype(np.float32)
    Hp, Wp = H - K + 1, W - K + 1

    def pool(x):
        out = np.zeros((B, C, Hp, Wp), np.float32)
        for i in range(K):
            for j in range(K):
                out += g[i, j] * x[:, :, i:i + Hp, j:j + Wp]
        return out

    def directional(p):
        c = p[:, :, 1:-1, 1:-1]
        return (c - p[:, :, 1:-1, :-2], c - p[:, :, 1:-1, 2:],
                c - p[:, :, :-2, 1:-1], c - p[:, :, 2:, 1:-1])

    op, ep = pool(org), pool(enh)
    ol, orr, ou, od = directional(op)
    el, er, eu, ed = directional(ep)
    return (ol - el) ** 2 + (orr - er) ** 2 + (ou - eu) ** 2 + (od - ed) ** 2


def _run_case(key, B, C, H, W, K, **kwargs):
    k1, k2 = jax.random.split(key)
    enhance = jax.random.uniform(k1, (B, C, H, W), dtype=jnp.float32)
    org = jax.random.uniform(k2, (B, C, H, W), dtype=jnp.float32)
    E = jax.block_until_ready(l_spa_pallas(enhance, org, K, **kwargs))
    assert E.shape == (B, C, H - K - 1, W - K - 1), E.shape
    E_ref = _reference_numpy(np.asarray(enhance), np.asarray(org), K)
    np.testing.assert_allclose(np.asarray(E), E_ref, rtol=1e-4, atol=1e-5)


if __name__ == "__main__":
    key = jax.random.PRNGKey(0)
    k1, k2, k3 = jax.random.split(key, 3)
    # Small canonical case (single h-tile per batch item).
    _run_case(k1, B=2, C=3, H=16, W=16, K=7)
    # Multi h-tile case: exercises the halo BlockSpecs across tiles and a
    # >128-column (partially masked) output store.
    _run_case(k2, B=2, C=3, H=40, W=160, K=7, th_target=16)
    # Ragged-height fallback path (Ho not a multiple of 8).
    _run_case(k3, B=1, C=3, H=21, W=24, K=7)
    print("KERNEL_OK")
</pallas_src>

<mosaic_0001>
module attributes {stable_mosaic.version = 11 : i64} {
  func.func @_l_spa_kernel(%arg0: i32, %arg1: i32, %arg2: memref<1x3x8x16xf32, #tpu.memory_space<vmem>>, %arg3: memref<1x3x8x16xf32, #tpu.memory_space<vmem>>, %arg4: memref<1x3x8x16xf32, #tpu.memory_space<vmem>>, %arg5: memref<1x3x8x16xf32, #tpu.memory_space<vmem>>, %arg6: memref<1x3x8x8xf32, #tpu.memory_space<vmem>>, %arg7: memref<3x16x16xf32, #tpu.memory_space<vmem>>) attributes {dimension_semantics = [#tpu.dimension_semantics<parallel>, #tpu.dimension_semantics<parallel>], iteration_bounds = array<i64: 2, 1>, scalar_prefetch = 0 : i64, scratch_operands = 1 : i64, tpu.core_type = #tpu.core_type<tc>, window_params = [{transform_indices = @transform_0, window_bounds = array<i64: 1, 3, 8, 16>}, {transform_indices = @transform_1, window_bounds = array<i64: 1, 3, 8, 16>}, {transform_indices = @transform_2, window_bounds = array<i64: 1, 3, 8, 16>}, {transform_indices = @transform_3, window_bounds = array<i64: 1, 3, 8, 16>}, {transform_indices = @transform_4, window_bounds = array<i64: 1, 3, 8, 8>}]} {
    %c0 = arith.constant 0 : index
    %c0_0 = arith.constant 0 : index
    %c0_1 = arith.constant 0 : index
    %c0_2 = arith.constant 0 : index
    %0 = vector.load %arg2[%c0, %c0_0, %c0_1, %c0_2] : memref<1x3x8x16xf32, #tpu.memory_space<vmem>>, vector<1x3x8x16xf32>
    %1 = vector.shape_cast %0 : vector<1x3x8x16xf32> to vector<3x8x16xf32>
    %c0_3 = arith.constant 0 : index
    %c0_4 = arith.constant 0 : index
    %c0_5 = arith.constant 0 : index
    %c0_6 = arith.constant 0 : index
    %2 = vector.load %arg3[%c0_3, %c0_4, %c0_5, %c0_6] : memref<1x3x8x16xf32, #tpu.memory_space<vmem>>, vector<1x3x8x16xf32>
    %3 = vector.shape_cast %2 : vector<1x3x8x16xf32> to vector<3x8x16xf32>
    %4 = arith.subf %1, %3 : vector<3x8x16xf32>
    %c0_7 = arith.constant 0 : index
    %c0_8 = arith.constant 0 : index
    %c0_9 = arith.constant 0 : index
    %5 = vector.load %arg7[%c0_7, %c0_8, %c0_9] : memref<3x16x16xf32, #tpu.memory_space<vmem>>, vector<3x8x16xf32>
    tpu.vector_store %arg7[%c0_7, %c0_8, %c0_9], %4 {strides = array<i32>} : memref<3x16x16xf32, #tpu.memory_space<vmem>>, vector<3x8x16xf32>,
    %c0_10 = arith.constant 0 : index
    %c0_11 = arith.constant 0 : index
    %c0_12 = arith.constant 0 : index
    %c0_13 = arith.constant 0 : index
    %6 = vector.load %arg4[%c0_10, %c0_11, %c0_12, %c0_13] : memref<1x3x8x16xf32, #tpu.memory_space<vmem>>, vector<1x3x8x16xf32>
    %7 = vector.shape_cast %6 : vector<1x3x8x16xf32> to vector<3x8x16xf32>
    %c0_14 = arith.constant 0 : index
    %c0_15 = arith.constant 0 : index
    %c0_16 = arith.constant 0 : index
    %c0_17 = arith.constant 0 : index
    %8 = vector.load %arg5[%c0_14, %c0_15, %c0_16, %c0_17] : memref<1x3x8x16xf32, #tpu.memory_space<vmem>>, vector<1x3x8x16xf32>
    %9 = vector.shape_cast %8 : vector<1x3x8x16xf32> to vector<3x8x16xf32>
    %10 = arith.subf %7, %9 : vector<3x8x16xf32>
    %c0_18 = arith.constant 0 : index
    %c8 = arith.constant 8 : index
    %c0_19 = arith.constant 0 : index
    %11 = vector.load %arg7[%c0_18, %c8, %c0_19] : memref<3x16x16xf32, #tpu.memory_space<vmem>>, vector<3x8x16xf32>
    tpu.vector_store %arg7[%c0_18, %c8, %c0_19], %10 {strides = array<i32>} : memref<3x16x16xf32, #tpu.memory_space<vmem>>, vector<3x8x16xf32>,
    %c0_20 = arith.constant 0 : index
    %c0_21 = arith.constant 0 : index
    %c0_22 = arith.constant 0 : index
    %12 = vector.load %arg7[%c0_20, %c0_21, %c0_22] : memref<3x16x16xf32, #tpu.memory_space<vmem>>, vector<3x10x16xf32>
    %cst = arith.constant 0.0524475276 : f32
    %13 = vector.broadcast %cst : f32 to vector<3x10x16xf32>
    %14 = arith.mulf %13, %12 : vector<3x10x16xf32>
    %c0_23 = arith.constant 0 : index
    %c1 = arith.constant 1 : index
    %c0_24 = arith.constant 0 : index
    %15 = vector.load %arg7[%c0_23, %c1, %c0_24] : memref<3x16x16xf32, #tpu.memory_space<vmem>>, vector<3x10x16xf32>
    %cst_25 = arith.constant 0.118645459 : f32
    %16 = vector.broadcast %cst_25 : f32 to vector<3x10x16xf32>
    %17 = arith.mulf %16, %15 : vector<3x10x16xf32>
    %18 = arith.addf %14, %17 : vector<3x10x16xf32>
    %c0_26 = arith.constant 0 : index
    %c2 = arith.constant 2 : index
    %c0_27 = arith.constant 0 : index
    %19 = vector.load %arg7[%c0_26, %c2, %c0_27] : memref<3x16x16xf32, #tpu.memory_space<vmem>>, vector<3x10x16xf32>
    %cst_28 = arith.constant 0.193627387 : f32
    %20 = vector.broadcast %cst_28 : f32 to vector<3x10x16xf32>
    %21 = arith.mulf %20, %19 : vector<3x10x16xf32>
    %22 = arith.addf %18, %21 : vector<3x10x16xf32>
    %c0_29 = arith.constant 0 : index
    %c3 = arith.constant 3 : index
    %c0_30 = arith.constant 0 : index
    %23 = vector.load %arg7[%c0_29, %c3, %c0_30] : memref<3x16x16xf32, #tpu.memory_space<vmem>>, vector<3x10x16xf32>
    %cst_31 = arith.constant 0.227967024 : f32
    %24 = vector.broadcast %cst_31 : f32 to vector<3x10x16xf32>
    %25 = arith.mulf %24, %23 : vector<3x10x16xf32>
    %26 = arith.addf %22, %25 : vector<3x10x16xf32>
    %c0_32 = arith.constant 0 : index
    %c4 = arith.constant 4 : index
    %c0_33 = arith.constant 0 : index
    %27 = vector.load %arg7[%c0_32, %c4, %c0_33] : memref<3x16x16xf32, #tpu.memory_space<vmem>>, vector<3x10x16xf32>
    %cst_34 = arith.constant 0.193627387 : f32
    %28 = vector.broadcast %cst_34 : f32 to vector<3x10x16xf32>
    %29 = arith.mulf %28, %27 : vector<3x10x16xf32>
    %30 = arith.addf %26, %29 : vector<3x10x16xf32>
    %c0_35 = arith.constant 0 : index
    %c5 = arith.constant 5 : index
    %c0_36 = arith.constant 0 : index
    %31 = vector.load %arg7[%c0_35, %c5, %c0_36] : memref<3x16x16xf32, #tpu.memory_space<vmem>>, vector<3x10x16xf32>
    %cst_37 = arith.constant 0.118645459 : f32
    %32 = vector.broadcast %cst_37 : f32 to vector<3x10x16xf32>
    %33 = arith.mulf %32, %31 : vector<3x10x16xf32>
    %34 = arith.addf %30, %33 : vector<3x10x16xf32>
    %c0_38 = arith.constant 0 : index
    %c6 = arith.constant 6 : index
    %c0_39 = arith.constant 0 : index
    %35 = vector.load %arg7[%c0_38, %c6, %c0_39] : memref<3x16x16xf32, #tpu.memory_space<vmem>>, vector<3x10x16xf32>
    %cst_40 = arith.constant 0.0524475276 : f32
    %36 = vector.broadcast %cst_40 : f32 to vector<3x10x16xf32>
    %37 = arith.mulf %36, %35 : vector<3x10x16xf32>
    %38 = arith.addf %34, %37 : vector<3x10x16xf32>
    %39 = vector.extract_strided_slice %38 {offsets = [0, 0, 0], sizes = [3, 10, 10], strides = [1, 1, 1]} : vector<3x10x16xf32> to vector<3x10x10xf32>
    %cst_41 = arith.constant 0.230066299 : f32
    %40 = vector.broadcast %cst_41 : f32 to vector<3x10x10xf32>
    %41 = arith.mulf %40, %39 : vector<3x10x10xf32>
    %42 = vector.extract_strided_slice %38 {offsets = [0, 0, 1], sizes = [3, 10, 10], strides = [1, 1, 1]} : vector<3x10x16xf32> to vector<3x10x10xf32>
    %cst_42 = arith.constant 0.520450115 : f32
    %43 = vector.broadcast %cst_42 : f32 to vector<3x10x10xf32>
    %44 = arith.mulf %43, %42 : vector<3x10x10xf32>
    %45 = arith.addf %41, %44 : vector<3x10x10xf32>
    %46 = vector.extract_strided_slice %38 {offsets = [0, 0, 2], sizes = [3, 10, 10], strides = [1, 1, 1]} : vector<3x10x16xf32> to vector<3x10x10xf32>
    %cst_43 = arith.constant 0.84936583 : f32
    %47 = vector.broadcast %cst_43 : f32 to vector<3x10x10xf32>
    %48 = arith.mulf %47, %46 : vector<3x10x10xf32>
    %49 = arith.addf %45, %48 : vector<3x10x10xf32>
    %50 = vector.extract_strided_slice %38 {offsets = [0, 0, 3], sizes = [3, 10, 10], strides = [1, 1, 1]} : vector<3x10x16xf32> to vector<3x10x10xf32>
    %cst_44 = arith.constant 1.000000e+00 : f32
    %51 = vector.broadcast %cst_44 : f32 to vector<3x10x10xf32>
    %52 = arith.mulf %51, %50 : vector<3x10x10xf32>
    %53 = arith.addf %49, %52 : vector<3x10x10xf32>
    %54 = vector.extract_strided_slice %38 {offsets = [0, 0, 4], sizes = [3, 10, 10], strides = [1, 1, 1]} : vector<3x10x16xf32> to vector<3x10x10xf32>
    %cst_45 = arith.constant 0.84936583 : f32
    %55 = vector.broadcast %cst_45 : f32 to vector<3x10x10xf32>
    %56 = arith.mulf %55, %54 : vector<3x10x10xf32>
    %57 = arith.addf %53, %56 : vector<3x10x10xf32>
    %58 = vector.extract_strided_slice %38 {offsets = [0, 0, 5], sizes = [3, 10, 10], strides = [1, 1, 1]} : vector<3x10x16xf32> to vector<3x10x10xf32>
    %cst_46 = arith.constant 0.520450115 : f32
    %59 = vector.broadcast %cst_46 : f32 to vector<3x10x10xf32>
    %60 = arith.mulf %59, %58 : vector<3x10x10xf32>
    %61 = arith.addf %57, %60 : vector<3x10x10xf32>
    %62 = vector.extract_strided_slice %38 {offsets = [0, 0, 6], sizes = [3, 10, 10], strides = [1, 1, 1]} : vector<3x10x16xf32> to vector<3x10x10xf32>
    %cst_47 = arith.constant 0.230066299 : f32
    %63 = vector.broadcast %cst_47 : f32 to vector<3x10x10xf32>
    %64 = arith.mulf %63, %62 : vector<3x10x10xf32>
    %65 = arith.addf %61, %64 : vector<3x10x10xf32>
    %66 = vector.extract_strided_slice %65 {offsets = [0, 1, 1], sizes = [3, 8, 9], strides = [1, 1, 1]} : vector<3x10x10xf32> to vector<3x8x9xf32>
    %67 = vector.extract_strided_slice %65 {offsets = [0, 1, 0], sizes = [3, 8, 9], strides = [1, 1, 1]} : vector<3x10x10xf32> to vector<3x8x9xf32>
    %68 = arith.subf %66, %67 : vector<3x8x9xf32>
    %69 = vector.extract_strided_slice %65 {offsets = [0, 1, 1], sizes = [3, 9, 8], strides = [1, 1, 1]} : vector<3x10x10xf32> to vector<3x9x8xf32>
    %70 = vector.extract_strided_slice %65 {offsets = [0, 0, 1], sizes = [3, 9, 8], strides = [1, 1, 1]} : vector<3x10x10xf32> to vector<3x9x8xf32>
    %71 = arith.subf %69, %70 : vector<3x9x8xf32>
    %72 = vector.extract_strided_slice %68 {offsets = [0, 0, 0], sizes = [3, 8, 8], strides = [1, 1, 1]} : vector<3x8x9xf32> to vector<3x8x8xf32>
    %73 = vector.extract_strided_slice %68 {offsets = [0, 0, 0], sizes = [3, 8, 8], strides = [1, 1, 1]} : vector<3x8x9xf32> to vector<3x8x8xf32>
    %74 = arith.mulf %72, %73 : vector<3x8x8xf32>
    %75 = vector.extract_strided_slice %68 {offsets = [0, 0, 1], sizes = [3, 8, 8], strides = [1, 1, 1]} : vector<3x8x9xf32> to vector<3x8x8xf32>
    %76 = vector.extract_strided_slice %68 {offsets = [0, 0, 1], sizes = [3, 8, 8], strides = [1, 1, 1]} : vector<3x8x9xf32> to vector<3x8x8xf32>
    %77 = arith.mulf %75, %76 : vector<3x8x8xf32>
    %78 = arith.addf %74, %77 : vector<3x8x8xf32>
    %79 = vector.extract_strided_slice %71 {offsets = [0, 0, 0], sizes = [3, 8, 8], strides = [1, 1, 1]} : vector<3x9x8xf32> to vector<3x8x8xf32>
    %80 = vector.extract_strided_slice %71 {offsets = [0, 0, 0], sizes = [3, 8, 8], strides = [1, 1, 1]} : vector<3x9x8xf32> to vector<3x8x8xf32>
    %81 = arith.mulf %79, %80 : vector<3x8x8xf32>
    %82 = arith.addf %78, %81 : vector<3x8x8xf32>
    %83 = vector.extract_strided_slice %71 {offsets = [0, 1, 0], sizes = [3, 8, 8], strides = [1, 1, 1]} : vector<3x9x8xf32> to vector<3x8x8xf32>
    %84 = vector.extract_strided_slice %71 {offsets = [0, 1, 0], sizes = [3, 8, 8], strides = [1, 1, 1]} : vector<3x9x8xf32> to vector<3x8x8xf32>
    %85 = arith.mulf %83, %84 : vector<3x8x8xf32>
    %86 = arith.addf %82, %85 : vector<3x8x8xf32>
    %c0_48 = arith.constant 0 : index
    %c0_49 = arith.constant 0 : index
    %c0_50 = arith.constant 0 : index
    %c0_51 = arith.constant 0 : index
    %87 = vector.load %arg6[%c0_48, %c0_49, %c0_50, %c0_51] : memref<1x3x8x8xf32, #tpu.memory_space<vmem>>, vector<1x3x8x8xf32>
    %88 = vector.shape_cast %87 : vector<1x3x8x8xf32> to vector<3x8x8xf32>
    %89 = vector.shape_cast %86 : vector<3x8x8xf32> to vector<1x3x8x8xf32>
    tpu.vector_store %arg6[%c0_48, %c0_49, %c0_50, %c0_51], %89 {strides = array<i32>} : memref<1x3x8x8xf32, #tpu.memory_space<vmem>>, vector<1x3x8x8xf32>,
    return
  }
  func.func @transform_0(%arg0: i32, %arg1: i32) -> (i32, i32, i32, i32) {
    %c0_i32 = arith.constant 0 : i32
    %c0_i32_0 = arith.constant 0 : i32
    %c0_i32_1 = arith.constant 0 : i32
    return %arg0, %c0_i32, %arg1, %c0_i32_0 : i32, i32, i32, i32
  }
  func.func @transform_1(%arg0: i32, %arg1: i32) -> (i32, i32, i32, i32) {
    %c0_i32 = arith.constant 0 : i32
    %c0_i32_0 = arith.constant 0 : i32
    %c0_i32_1 = arith.constant 0 : i32
    return %arg0, %c0_i32, %arg1, %c0_i32_0 : i32, i32, i32, i32
  }
  func.func @transform_2(%arg0: i32, %arg1: i32) -> (i32, i32, i32, i32) {
    %c1_i32 = arith.constant 1 : i32
    %0 = arith.addi %arg1, %c1_i32 : i32
    %c1_i32_0 = arith.constant 1 : i32
    %1 = arith.muli %0, %c1_i32_0 : i32
    %c1_i32_1 = arith.constant 1 : i32
    %2 = arith.minsi %1, %c1_i32_1 : i32
    %c0_i32 = arith.constant 0 : i32
    %c0_i32_2 = arith.constant 0 : i32
    %c0_i32_3 = arith.constant 0 : i32
    return %arg0, %c0_i32, %2, %c0_i32_2 : i32, i32, i32, i32
  }
  func.func @transform_3(%arg0: i32, %arg1: i32) -> (i32, i32, i32, i32) {
    %c1_i32 = arith.constant 1 : i32
    %0 = arith.addi %arg1, %c1_i32 : i32
    %c1_i32_0 = arith.constant 1 : i32
    %1 = arith.muli %0, %c1_i32_0 : i32
    %c1_i32_1 = arith.constant 1 : i32
    %2 = arith.minsi %1, %c1_i32_1 : i32
    %c0_i32 = arith.constant 0 : i32
    %c0_i32_2 = arith.constant 0 : i32
    %c0_i32_3 = arith.constant 0 : i32
    return %arg0, %c0_i32, %2, %c0_i32_2 : i32, i32, i32, i32
  }
  func.func @transform_4(%arg0: i32, %arg1: i32) -> (i32, i32, i32, i32) {
    %c0_i32 = arith.constant 0 : i32
    %c0_i32_0 = arith.constant 0 : i32
    %c0_i32_1 = arith.constant 0 : i32
    return %arg0, %c0_i32, %arg1, %c0_i32_0 : i32, i32, i32, i32
  }
}

</mosaic_0001>

<bundles_post_ra>
// kernel: tpu_custom_call.1
= control target key start
LH: loop header
LB: loop body
LE: loop exit
PB: predicated region body
PF: predicated region fallthrough
CT: control target
= control target key end

     0   :  { %s1798_s0 = inlined_call_operand.hbm [shape: f32[2,3,16,16], index: 0, kind: input, shape index: {}]   ;;  %s1799_s1 = inlined_call_operand.hbm [shape: f32[2,3,16,16], index: 1, kind: input, shape index: {}]   ;;  %s1800_s2 = inlined_call_operand.hbm [shape: f32[2,3,16,16], index: 2, kind: input, shape index: {}]   ;;  %s1801_s3 = inlined_call_operand.hbm [shape: f32[2,3,16,16], index: 3, kind: input, shape index: {}]   ;;  %s1802_s4 = inlined_call_operand.hbm [shape: f32[2,3,8,8], index: 4, kind: output, shape index: {}]  }
   0x1   :  { %1814 = sst [smem:[#allocation20_spill]] %s1798_s0 }
   0x2   :  { %1815 = sst [smem:[#allocation21_spill]] %s1799_s1 }
   0x3   :  { %9 = vsyncpa [#allocation4], 0 }
   0x4   :  { %11 = vsyncpa [#allocation4 + $0x1], 0 }
   0x5   :  { %12 = vsyncpa [#allocation7], 0 }
   0x6   :  { %14 = vsyncpa [#allocation7 + $0x1], 0 }
   0x7   :  { %15 = vsyncpa [#allocation10], 0 }
   0x8   :  { %17 = vsyncpa [#allocation10 + $0x1], 0 }
   0x9   :  { %18 = vsyncpa [#allocation5], 0 }
   0xa   :  { %20 = vsyncpa [#allocation5 + $0x1], 0  ;;  %s1417_s15 = smov 0   ;;  %s1419_s16 = smov 0  }
   0xb   :  { %s1421_s17 = smov 0   ;;  %s1423_s18 = smov 0  }
   0xc   :  { %s1425_s19 = smov 0   ;;  %s1427_s20 = smov 0  }
   0xd LB: > { %1816 = sst [smem:[#allocation16_spill]] %s1361_s17  ;;  %s1448_s21 = sadd.s32 4294967295, %s1373_s20   ;;  %s1373_s20 = sphi %s1427_s20, %s26_s20   ;;  %s1369_s19 = sphi %s1425_s19, %s1840_s19   ;;  %s1365_s18 = sphi %s1423_s18, %s1839_s18   ;;  %s1361_s17 = sphi %s1421_s17, %s1838_s17   ;;  %s1357_s16 = sphi %s1419_s16, %s1842_s16   ;;  %s1353_s15 = sphi %s1417_s15, %s1841_s15  }
   0xe   : > { %1817 = sst [smem:[#allocation17_spill]] %s1369_s19  ;;  %s1047_s22 = sadd.s32 4294967294, %s1373_s20  }
   0xf   : > { %s38_s23 = sadd.s32 1, %s1369_s19  ;;  %s47_s24 = sadd.s32 1, %s1361_s17 }
  0x10   : > { %p40_p0 = scmp.ge.s32.totalorder %s38_s23, 2  ;;  %p54_p1 = scmp.ne.s32.totalorder %s1361_s17, %s1357_s16 }
  0x11   : > { %p55_p2 = scmp.eq.s32.totalorder %s1373_s20, 0  ;;  %p60_p3 = scmp.ne.s32.totalorder %s1357_s16, %s1353_s15 }
  0x12   : > { %s1844_s23 = smov (%p40_p0, %s38_s23), 0  ;;  %p61_p5 = scmp.eq.s32.totalorder %s1448_s21, 0 }
  0x13   : > { %1818 = sst [smem:[#allocation18_spill]] %s1844_s23  ;;  %p1460_p4 = por %p55_p2, %p54_p1 }
  0x14   : > { %s42_s26 = ssub.s32 %s1369_s19, %s1844_s23  ;;  %p182_p6 = scmp.eq.s32.totalorder %s1448_s21, 1 }
  0x15   : > { %p45_p7 = scmp.eq.s32.totalorder %s42_s26, 0  ;;  %p1468_p8 = por %p61_p5, %p60_p3 }
  0x16   : > { %p1472_p9 = por %p182_p6, %p54_p1  ;;  %p188_p10 = scmp.eq.s32.totalorder %s1047_s22, 1 }
  0x17   : > { %s1820_s27 = scalar_select %p1468_p8, 1, 0 }
  0x18   : > { %s1821_s28 = scalar_select %p1472_p9, 1, 0 }
  0x19   : > { %s1477_s29 = scalar_select %p45_p7, %s1361_s17, %s47_s24  }
  0x1a   : > { %p1479_p11 = por %p188_p10, %p60_p3  ;;  %p1099_p13 = scmp.lt.s32.totalorder %s1373_s20, 2 }
  0x1b   : > { %1822 = sst [smem:[#allocation19_spill]] %s1477_s29  ;;  %s1486_s5 = sand.u32 1, %s1361_s17  }
  0x1c   : > { %s1823_s30 = scalar_select %p1479_p11, 1, 0 }
  0x1d   : > { %s1489_s6 = smul.u32 24, %s1486_s5  ;;  %p1496_p0 = pnand %p1099_p13, %p1460_p4 }
  0x1e   : > { %s1492_s7 = smul.u32 768, %s1369_s19  ;;  %s230_s9 = sand.u32 1, %s1373_s20  }
  0x1f   : > { %s1825_s1 = sld [smem:[#allocation21_spill]]  ;;  %s234_s13 = scalar_lea.vmem [#allocation6], %s1489_s6 }
  0x20   : > { %s242_s14 = sshll.u32 %s234_s13, 4  ;;  %s1510_s22 = scalar_lea.sflag [#allocation7], %s230_s9  ;;  %s1508_s14 = int_to_ptr.vmem [resolvable:$true] %s242_s14 }
  0x21   : > { %p1516_p2 = pneg %p1496_p0 }
  0x25   : > { %s1505_s12 = scalar_lea.hbm %s1825_s1, %s1492_s7  ;;  %s1168_s11 = scalar_lea.hbm %s1825_s1, 1536 }
  0x26   : > { %s1163_s24 = scalar_lea.hbm %s1505_s12, 384  ;;  %p1169_p5 = scmp.lt.u32.totalorder %s1505_s12, %s1825_s1 }
  0x27   : > { %p1164_p1 = scmp.ne.s32.totalorder %s1505_s12, %s1163_s24  ;;  %p1170_p6 = scmp.lt.u32.totalorder %s1168_s11, %s1163_s24 }
  0x28   : > { %p1172_p10 = scmp.lt.u32.totalorder %s1163_s24, %s1505_s12 }
  0x29   : > { %p1166_p3 = pnand %p1516_p2, %p1164_p1  ;;  %p1171_p7 = por %p1170_p6, %p1169_p5 }
  0x2b   : > { %p1167_p4 = pneg %p1166_p3  ;;  %p1173_p13 = por %p1172_p10, %p1171_p7 }
  0x2d   : > { %p1174_p12 = pnand %p1173_p13, %p1167_p4 }
  0x2f   : > { %1177 = shalt.err (!%p1174_p12)
}
  0x30   : > { %s1178_s9 = scalar_lea.vmem %s1508_s14, 384  ;;  %s1375_s26 = smov [#allocation6]  }
  0x31   : > { %p1179_p1 = scmp.ne.s32.totalorder %s1508_s14, %s1178_s9  ;;  %s1183_s10 = sshll.u32 %s1375_s26, 4  ;;  %s1184_s10 = int_to_ptr.vmem [resolvable:$false] %s1183_s10 }
  0x32   : > { %s1185_s23 = scalar_lea.vmem %s1184_s10, 768  ;;  %p1186_p9 = scmp.lt.s32.totalorder %s1508_s14, %s1184_s10 }
  0x33   : > { %p1181_p3 = pnand %p1179_p1, %p1516_p2  ;;  %p1187_p8 = scmp.lt.s32.totalorder %s1185_s23, %s1178_s9 }
  0x35   : > { %p1182_p11 = pneg %p1181_p3  ;;  %p1188_p5 = por %p1187_p8, %p1186_p9 }
  0x37   : > { %p1189_p6 = pnand %p1188_p5, %p1182_p11 }
  0x39   : > { %1192 = shalt.err (!%p1189_p6)
}
  0x3a   : > { %s1807_s24 = smov 256   ;;  %s1809_s11 = smov 128  }
  0x3b   : > { %s1811_s13 = smov 8   ;;  %p1054_p8 = scmp.ge.s32.totalorder %s1373_s20, 1 }
  0x3c   : > { %1088 = dma.hbm_to_vmem [thread:$0]  (!%p1496_p0), %s1505_s12, 384, %s1508_s14, %s1510_s22, %s1807_s24, %s1809_s11, %s1811_s13  }
  0x3d   : > { %p300_p9 = scmp.lt.s32.totalorder %s1373_s20, 3  ;;  %s1828_s0 = sld [smem:[#allocation20_spill]] }
  0x3e   : > { %s212_s1 = scalar_lea.vmem [#allocation3], %s1489_s6  ;;  %s1059_s12 = sadd.s32 128, %s1492_s7 }
  0x3f   : > { %p1545_p11 = pnand %p1054_p8, %p300_p9  ;;  %s220_s19 = sshll.u32 %s212_s1, 4  ;;  %s1556_s19 = int_to_ptr.vmem [resolvable:$true] %s220_s19 }
  0x40   : > { %s209_s14 = scalar_lea.sflag [#allocation4], %s1486_s5 }
  0x41   : > { %s1827_s9 = scalar_select %p1545_p11, 1, 0 }
  0x43   : > { %s1553_s23 = scalar_lea.hbm %s1828_s0, %s1492_s7  ;;  %s1198_s26 = scalar_lea.hbm %s1828_s0, 1536 }
  0x44   : > { %s1193_s24 = scalar_lea.hbm %s1553_s23, 384  ;;  %p1199_p10 = scmp.lt.u32.totalorder %s1553_s23, %s1828_s0 }
  0x45   : > { %p1194_p12 = scmp.ne.s32.totalorder %s1553_s23, %s1193_s24  ;;  %p1200_p13 = scmp.lt.u32.totalorder %s1198_s26, %s1193_s24 }
  0x46   : > { %p1202_p3 = scmp.lt.u32.totalorder %s1193_s24, %s1553_s23 }
  0x47   : > { %p1196_p4 = pnand %p1194_p12, %p1516_p2  ;;  %p1201_p1 = por %p1200_p13, %p1199_p10 }
  0x49   : > { %p1197_p7 = pneg %p1196_p4  ;;  %p1203_p5 = por %p1202_p3, %p1201_p1 }
  0x4b   : > { %p1204_p6 = pnand %p1203_p5, %p1197_p7 }
  0x4d   : > { %1207 = shalt.err (!%p1204_p6)
}
  0x4e   : > { %s1208_s1 = scalar_lea.vmem %s1556_s19, 384  ;;  %s1379_s11 = smov [#allocation3]  }
  0x4f   : > { %p1209_p8 = scmp.ne.s32.totalorder %s1556_s19, %s1208_s1  ;;  %s1213_s13 = sshll.u32 %s1379_s11, 4  ;;  %s1214_s13 = int_to_ptr.vmem [resolvable:$false] %s1213_s13 }
  0x50   : > { %s1215_s29 = scalar_lea.vmem %s1214_s13, 768  ;;  %p1216_p4 = scmp.lt.s32.totalorder %s1556_s19, %s1214_s13 }
  0x51   : > { %p1211_p9 = pnand %p1209_p8, %p1516_p2  ;;  %p1217_p11 = scmp.lt.s32.totalorder %s1215_s29, %s1208_s1 }
  0x53   : > { %p1212_p12 = pneg %p1211_p9  ;;  %p1218_p10 = por %p1217_p11, %p1216_p4 }
  0x55   : > { %p1219_p13 = pnand %p1218_p10, %p1212_p12 }
  0x57   : > { %1222 = shalt.err (!%p1219_p13)
}
  0x58   : > { %s1829_s24 = smov 8   ;;  %s1830_s26 = smov 128  }
  0x59   : > { %s1831_s10 = smov 256   ;;  %s1591_s1 = scalar_lea.hbm %s1800_s2, %s1059_s12 }
  0x5a   : > { %1085 = dma.hbm_to_vmem [thread:$0]  (!%p1496_p0), %s1553_s23, 384, %s1556_s19, %s209_s14, %s1831_s10, %s1830_s26, %s1829_s24  }
  0x5b   : > { %s256_s29 = scalar_lea.vmem [#allocation8], %s1489_s6  ;;  %s1223_s17 = scalar_lea.hbm %s1591_s1, 384 }
  0x5c   : > { %s267_s0 = sshll.u32 %s256_s29, 4  ;;  %p1224_p11 = scmp.ne.s32.totalorder %s1591_s1, %s1223_s17  ;;  %s1594_s0 = int_to_ptr.vmem [resolvable:$true] %s267_s0 }
  0x5d   : > { %s1228_s14 = scalar_lea.hbm %s1800_s2, 1536  ;;  %p1229_p3 = scmp.lt.u32.totalorder %s1591_s1, %s1800_s2 }
  0x5e   : > { %p1226_p7 = pnand %p1224_p11, %p1516_p2  ;;  %p1230_p5 = scmp.lt.u32.totalorder %s1228_s14, %s1223_s17 }
  0x5f   : > { %p1232_p8 = scmp.lt.u32.totalorder %s1223_s17, %s1591_s1 }
  0x60   : > { %p1227_p1 = pneg %p1226_p7  ;;  %p1231_p6 = por %p1230_p5, %p1229_p3 }
  0x62   : > { %p1233_p9 = por %p1232_p8, %p1231_p6 }
  0x64   : > { %p1234_p12 = pnand %p1233_p9, %p1227_p1 }
  0x66   : > { %1237 = shalt.err (!%p1234_p12)
}
  0x67   : > { %s1238_s29 = scalar_lea.vmem %s1594_s0, 384  ;;  %s1380_s19 = smov [#allocation8]  }
  0x68   : > { %p1239_p4 = scmp.ne.s32.totalorder %s1594_s0, %s1238_s29  ;;  %s1243_s23 = sshll.u32 %s1380_s19, 4  ;;  %s1244_s23 = int_to_ptr.vmem [resolvable:$false] %s1243_s23 }
  0x69   : > { %s1245_s11 = scalar_lea.vmem %s1244_s23, 768  ;;  %p1246_p11 = scmp.lt.s32.totalorder %s1594_s0, %s1244_s23 }
  0x6a   : > { %p1241_p10 = pnand %p1239_p4, %p1516_p2  ;;  %p1247_p7 = scmp.lt.s32.totalorder %s1245_s11, %s1238_s29 }
  0x6c   : > { %p1242_p13 = pneg %p1241_p10  ;;  %p1248_p3 = por %p1247_p7, %p1246_p11 }
  0x6e   : > { %p1249_p5 = pnand %p1248_p3, %p1242_p13 }
  0x70   : > { %1252 = shalt.err (!%p1249_p5)
}
  0x71   : > { %1091 = dma.hbm_to_vmem [thread:$0]  (!%p1496_p0), %s1591_s1, 384, %s1594_s0, %s1510_s22, %s1831_s10, %s1830_s26, %s1829_s24  }
  0x72   : > { %s1626_s13 = scalar_lea.hbm %s1801_s3, %s1059_s12  ;;  %s281_s29 = scalar_lea.vmem [#allocation9], %s1489_s6 }
  0x73   : > { %s292_s19 = sshll.u32 %s281_s29, 4  ;;  %s278_s23 = scalar_lea.sflag [#allocation10], %s1486_s5  ;;  %s1629_s19 = int_to_ptr.vmem [resolvable:$true] %s292_s19 }
  0x74   : > { %s1253_s11 = scalar_lea.hbm %s1626_s13, 384  ;;  %s1258_s22 = scalar_lea.hbm %s1801_s3, 1536 }
  0x75   : > { %p1254_p1 = scmp.ne.s32.totalorder %s1626_s13, %s1253_s11  ;;  %p1259_p9 = scmp.lt.u32.totalorder %s1626_s13, %s1801_s3 }
  0x76   : > { %p1260_p12 = scmp.lt.u32.totalorder %s1258_s22, %s1253_s11  ;;  %p1262_p10 = scmp.lt.u32.totalorder %s1253_s11, %s1626_s13 }
  0x77   : > { %p1256_p6 = pnand %p1254_p1, %p1516_p2 }
  0x78   : > { %p1261_p4 = por %p1260_p12, %p1259_p9 }
  0x79   : > { %p1257_p8 = pneg %p1256_p6 }
  0x7a   : > { %p1263_p13 = por %p1262_p10, %p1261_p4 }
  0x7c   : > { %p1264_p11 = pnand %p1263_p13, %p1257_p8 }
  0x7e   : > { %1267 = shalt.err (!%p1264_p11)
}
  0x7f   : > { %s1268_s6 = scalar_lea.vmem %s1629_s19, 384  ;;  %s1381_s17 = smov [#allocation9]  }
  0x80   : > { %p1269_p7 = scmp.ne.s32.totalorder %s1629_s19, %s1268_s6  ;;  %s1273_s14 = sshll.u32 %s1381_s17, 4  ;;  %s1274_s14 = int_to_ptr.vmem [resolvable:$false] %s1273_s14 }
  0x81   : > { %s1275_s29 = scalar_lea.vmem %s1274_s14, 768  ;;  %p1276_p1 = scmp.lt.s32.totalorder %s1629_s19, %s1274_s14 }
  0x82   : > { %p1271_p3 = pnand %p1269_p7, %p1516_p2  ;;  %p1277_p6 = scmp.lt.s32.totalorder %s1275_s29, %s1268_s6 }
  0x84   : > { %p1272_p5 = pneg %p1271_p3  ;;  %p1278_p9 = por %p1277_p6, %p1276_p1 }
  0x86   : > { %p1279_p12 = pnand %p1278_p9, %p1272_p5 }
  0x88   : > { %1282 = shalt.err (!%p1279_p12)
}
  0x89   : > { %1094 = dma.hbm_to_vmem [thread:$0]  (!%p1496_p0), %s1626_s13, 384, %s1629_s19, %s278_s23, %s1831_s10, %s1830_s26, %s1829_s24  }
  0x8a   : > { %p1832_p2 = scmp.ne.s32.totalorder %s1827_s9, 0 }
  0x8b   : > { %s1661_s25 = sand.u32 (!%p1832_p2), 1, %s1357_s16   ;;  %p1833_p8 = scmp.ne.s32.totalorder (!%p1832_p2), %s1820_s27, 0 }
  0x8c   : > { %304 = sbr.rel (%p1832_p2) target bundleno = 746 (0x2ea), region = 36  ;;  %s307_s8 = scalar_lea.sflag (!%p1832_p2), [#allocation4], %s1661_s25 }
  0x8d   : > { %s1664_s11 = smul.u32 (!%p1832_p2), 24, %s1661_s25 }
  0x8f   : > { %s310_s0 = scalar_lea.vmem (!%p1832_p2), [#allocation3], %s1664_s11 }
  0x93   : > { %1336 = dma.done.wait (%p1833_p8), %s307_s8, 384  }
  0x94   : > { %1338 = vsyncadd (%p1833_p8), %s307_s8, 4294966912  ;;  %s315_s5 = sand.u32 1, %s1448_s21   ;;  %s319_s24 = scalar_lea.vmem [#allocation6], %s1664_s11 }
  0x95   : > { %s316_s9 = scalar_lea.sflag [#allocation7], %s315_s5 }
  0x96   : > { %1340 = dma.done.wait (%p1833_p8), %s316_s9, 768  }
  0x97   : > { %1342 = vsyncadd (%p1833_p8), %s316_s9, 4294966528  ;;  %s328_s26 = scalar_lea.vmem [#allocation8], %s1664_s11  ;;  %s334_s10 = scalar_lea.sflag [#allocation10], %s1661_s25 }
  0x98   : > { %s337_s13 = scalar_lea.vmem [#allocation9], %s1664_s11 }
  0x99   : > { %1344 = dma.done.wait (%p1833_p8), %s334_s10, 384  }
  0x9a   : > { %1346 = vsyncadd (%p1833_p8), %s334_s10, 4294966912  ;;  %vm392_vm0 = vcmask 130048   ;;  %v396_v0 = vld [vmem:[%s328_s26] sm:$0xff]  ;;  %v399_v1 = vld [vmem:[%s337_s13] sm:$0xff]  ;;  %s1382_s21 = smov 125   ;;  %s1383_s27 = smov 127  }
  0x9b   : > { %v383_v2 = vld [vmem:[%s310_s0] sm:$0xff]  ;;  %v402_v3 = vsub.f32 %v396_v0, %v399_v1  ;;  %v386_v4 = vld [vmem:[%s319_s24] sm:$0xff]  ;;  %v397_v5 = vld [vmem:[%s328_s26 + $0x8] sm:$0xff]  ;;  %s1384_s19 = smov 126   ;;  %s1385_s23 = smov 124   ;;  %vm744_vm1 = vcmask 1040384  }
  0x9c   : > { %v400_v6 = vld [vmem:[%s337_s13 + $0x8] sm:$0xff]  ;;  %v389_v7 = vsub.f32 %v383_v2, %v386_v4  ;;  %v384_v9 = vld [vmem:[%s310_s0 + $0x8] sm:$0xff]  ;;  %v398_v11 = vld [vmem:[%s328_s26 + $0x10] sm:$0xff]  ;;  %s1386_s7 = smov 123   ;;  %s1387_s22 = smov 122   ;;  %vm820_vm2 = vcmask 1046528  }
  0x9d   : > { %v403_v8 = vsub.f32 %v397_v5, %v400_v6  ;;  %v387_v10 = vld [vmem:[%s319_s24 + $0x8] sm:$0xff]  ;;  %405 = vst.msk [vmem:[#allocation2 + $0x8] sm:$0xff] %vm392_vm0, %v402_v3  ;;  %v401_v13 = vld [vmem:[%s337_s13 + $0x10] sm:$0xff]  ;;  %v385_v14 = vld [vmem:[%s310_s0 + $0x10] sm:$0xff]  ;;  %s1388_s12 = smov 1   ;;  %vm868_vm3 = vcmask 57344  }
  0x9e   : > { %v390_v12 = vsub.f32 %v384_v9, %v387_v10  ;;  %v388_v15 = vld [vmem:[%s319_s24 + $0x10] sm:$0xff]  ;;  %393 = vst.msk [vmem:[#allocation2] sm:$0xff] %vm392_vm0, %v389_v7  ;;  %v404_v16 = vsub.f32 %v398_v11, %v401_v13  ;;  %s376_s1 = scalar_lea.vmem [#allocation11], %s1664_s11  ;;  %vm866_vm4 = vcmask 64513   ;;  %s1071_s17 = smul.u32 384, %s1365_s18 }
  0x9f   : > { %406 = vst.msk [vmem:[#allocation2 + $0x18] sm:$0xff] %vm392_vm0, %v403_v8  ;;  %v391_v17 = vsub.f32 %v385_v14, %v388_v15  ;;  %s889_s6 = sshll.u32 %s376_s1, 4  ;;  %s875_s8 = scalar_lea.sflag [#allocation5], %s1661_s25  ;;  %s1744_s6 = int_to_ptr.vmem [resolvable:$true] %s889_s6 }
  0xa0   : > { %394 = vst.msk [vmem:[#allocation2 + $0x10] sm:$0xff] %vm392_vm0, %v390_v12  ;;  %407 = vst.msk [vmem:[#allocation2 + $0x28] sm:$0xff] %vm392_vm0, %v404_v16  ;;  %s1749_s11 = scalar_lea.hbm %s1802_s4, %s1071_s17  ;;  %s1283_s0 = scalar_lea.vmem %s1744_s6, 384 }
  0xa1   : > { %395 = vst.msk [vmem:[#allocation2 + $0x20] sm:$0xff] %vm392_vm0, %v391_v17  ;;  %p1284_p0 = scmp.ne.s32.totalorder %s1744_s6, %s1283_s0  ;;  %p1834_p4 = scmp.ne.s32.totalorder %s1821_s28, 0 }
  0xa2   : > { %s1389_s18 = smov [#allocation11]  }
  0xa3   : > { %p1285_p10 = pnand %p1284_p0, %p1834_p4  ;;  %s1287_s5 = sshll.u32 %s1389_s18, 4  ;;  %s1288_s5 = int_to_ptr.vmem [resolvable:$false] %s1287_s5 }
  0xa4   : > { %v409_v18 = vld [vmem:[#allocation2 + $0x8] sm:$0x3]  ;;  %v439_v20 = vld [vmem:[#allocation2 + $0xa] sm:$0x3]  ;;  %v475_v25 = vld [vmem:[#allocation2 + $0xc] sm:$0x3]  ;;  %p1290_p11 = scmp.lt.s32.totalorder %s1744_s6, %s1288_s5 }
  0xa5   : > { %v421_v19 = vld [vmem:[#allocation2 + $0x9] sm:$0x3]  ;;  %v415_v21 = vmul.f32 0.052447528, %v409_v18  ;;  %v445_v23 = vmul.f32 0.19362739, %v439_v20  ;;  %p1286_p13 = pneg %p1285_p10 }
  0xa6   : > { %v427_v22 = vmul.f32 0.11864546, %v421_v19  ;;  %v457_v24 = vld [vmem:[#allocation2 + $0xb] sm:$0x3]  ;;  %v493_v28 = vld [vmem:[#allocation2 + $0xd] sm:$0x3] }
  0xa7   : > { %v463_v27 = vmul.f32 0.22796702, %v457_v24  ;;  %v481_v29 = vmul.f32 0.19362739, %v475_v25  ;;  %v408_v30 = vld [vmem:[#allocation2] sm:$0xff]  ;;  %v410_v4 = vld [vmem:[#allocation2 + $0x10] sm:$0xff] }
  0xa8   : > { %v433_v26 = vadd.f32 %v427_v22, %v415_v21  ;;  %v420_v31 = vld [vmem:[#allocation2 + $0x1] sm:$0xff]  ;;  %v511_v33 = vld [vmem:[#allocation2 + $0xe] sm:$0x3]  ;;  %v414_v34 = vmul.f32 0.052447528, %v408_v30  ;;  %v422_v5 = vld [vmem:[#allocation2 + $0x11] sm:$0xff] }
  0xa9   : > { %v426_v35 = vmul.f32 0.11864546, %v420_v31  ;;  %v499_v36 = vmul.f32 0.11864546, %v493_v28  ;;  %v438_v37 = vld [vmem:[#allocation2 + $0x2] sm:$0xff]  ;;  %v440_v12 = vld [vmem:[#allocation2 + $0x12] sm:$0xff] }
  0xaa   : > { %v451_v32 = vadd.f32 %v445_v23, %v433_v26  ;;  %v456_v38 = vld [vmem:[#allocation2 + $0x3] sm:$0xff]  ;;  %v444_v42 = vmul.f32 0.19362739, %v438_v37  ;;  %v517_v44 = vmul.f32 0.052447528, %v511_v33  ;;  %v458_v13 = vld [vmem:[#allocation2 + $0x13] sm:$0xff] }
  0xab   : > { %v474_v39 = vld [vmem:[#allocation2 + $0x4] sm:$0xff]  ;;  %v432_v41 = vadd.f32 %v426_v35, %v414_v34  ;;  %v462_v43 = vmul.f32 0.22796702, %v456_v38  ;;  %v411_v50 = vld [vmem:[#allocation2 + $0x18] sm:$0x3]  ;;  %s1289_s9 = scalar_lea.vmem %s1288_s5, 768 }
  0xac   : > { %v469_v40 = vadd.f32 %v463_v27, %v451_v32  ;;  %v480_v45 = vmul.f32 0.19362739, %v474_v39  ;;  %v492_v46 = vld [vmem:[#allocation2 + $0x5] sm:$0xff]  ;;  %v423_v51 = vld [vmem:[#allocation2 + $0x19] sm:$0x3]  ;;  %p1291_p7 = scmp.lt.s32.totalorder %s1289_s9, %s1283_s0 }
  0xad   : > { %v510_v47 = vld [vmem:[#allocation2 + $0x6] sm:$0xff]  ;;  %v450_v49 = vadd.f32 %v444_v42, %v432_v41  ;;  %v441_v52 = vld [vmem:[#allocation2 + $0x1a] sm:$0x3]  ;;  %v417_v53 = vmul.f32 0.052447528, %v411_v50 }
  0xae   : > { %v487_v48 = vadd.f32 %v481_v29, %v469_v40  ;;  %v429_v54 = vmul.f32 0.11864546, %v423_v51  ;;  %v447_v55 = vmul.f32 0.19362739, %v441_v52  ;;  %v498_v58 = vmul.f32 0.11864546, %v492_v46  ;;  %p1292_p3 = por %p1291_p7, %p1290_p11 }
  0xaf   : > { %v468_v57 = vadd.f32 %v462_v43, %v450_v49  ;;  %v459_v59 = vld [vmem:[#allocation2 + $0x1b] sm:$0x3]  ;;  %v495_v63 = vld [vmem:[#allocation2 + $0x1d] sm:$0x3]  ;;  %v516_v2 = vmul.f32 0.052447528, %v510_v47 }
  0xb0   : > { %v505_v56 = vadd.f32 %v499_v36, %v487_v48  ;;  %v477_v60 = vld [vmem:[#allocation2 + $0x1c] sm:$0x3]  ;;  %v435_v61 = vadd.f32 %v429_v54, %v417_v53  ;;  %v465_v62 = vmul.f32 0.22796702, %v459_v59  ;;  %v513_v7 = vld [vmem:[#allocation2 + $0x1e] sm:$0x3]  ;;  %p1293_p5 = pnand %p1292_p3, %p1286_p13 }
  0xb1   : > { %v486_v1 = vadd.f32 %v480_v45, %v468_v57  ;;  %v483_v3 = vmul.f32 0.19362739, %v477_v60  ;;  %v416_v8 = vmul.f32 0.052447528, %v410_v4  ;;  %v428_v9 = vmul.f32 0.11864546, %v422_v5 }
  0xb2   : > { %v1691_v0 = vadd.f32 %v517_v44, %v505_v56  ;;  %v453_v6 = vadd.f32 %v447_v55, %v435_v61  ;;  %v501_v11 = vmul.f32 0.11864546, %v495_v63  ;;  %v476_v14 = vld [vmem:[#allocation2 + $0x14] sm:$0xff]  ;;  %v446_v17 = vmul.f32 0.19362739, %v440_v12  ;;  %v412_v44 = vld [vmem:[#allocation2 + $0x20] sm:$0xff] }
  0xb3   : > { %v504_v10 = vadd.f32 %v498_v58, %v486_v1  ;;  %v434_v16 = vadd.f32 %v428_v9, %v416_v8  ;;  %v464_v18 = vmul.f32 0.22796702, %v458_v13  ;;  %v519_v20 = vmul.f32 0.052447528, %v513_v7  ;;  %v494_v22 = vld [vmem:[#allocation2 + $0x15] sm:$0xff]  ;;  %v424_v45 = vld [vmem:[#allocation2 + $0x21] sm:$0xff] }
  0xb4   : > { %614 = vrot.lane.b32.xlu1 %v1691_v0, %s1382_s21  ;;  %v471_v15 = vadd.f32 %v465_v62, %v453_v6  ;;  %v482_v21 = vmul.f32 0.19362739, %v476_v14  ;;  %v512_v23 = vld [vmem:[#allocation2 + $0x16] sm:$0xff]  ;;  %v413_v26 = vld [vmem:[#allocation2 + $0x28] sm:$0x3] }
  0xb5   : > { %v1695_v19 = vadd.f32 %v516_v2, %v504_v10  ;;  %v452_v25 = vadd.f32 %v446_v17, %v434_v16  ;;  %v425_v27 = vld [vmem:[#allocation2 + $0x29] sm:$0x3]  ;;  %v419_v29 = vmul.f32 0.052447528, %v413_v26  ;;  %v500_v34 = vmul.f32 0.11864546, %v494_v22 }
  0xb6   : > { %v489_v24 = vadd.f32 %v483_v3, %v471_v15  ;;  %v443_v28 = vld [vmem:[#allocation2 + $0x2a] sm:$0x3]  ;;  %v431_v30 = vmul.f32 0.11864546, %v425_v27  ;;  %v479_v36 = vld [vmem:[#allocation2 + $0x2c] sm:$0x3] }
  0xb7   : > { %612 = vrot.lane.b32.xlu0 %v1695_v19, %s1382_s21  ;;  %v449_v31 = vmul.f32 0.19362739, %v443_v28  ;;  %v470_v33 = vadd.f32 %v464_v18, %v452_v25  ;;  %v461_v35 = vld [vmem:[#allocation2 + $0x2b] sm:$0x3]  ;;  %v497_v39 = vld [vmem:[#allocation2 + $0x2d] sm:$0x3] }
  0xb8   : > { %v507_v32 = vadd.f32 %v501_v11, %v489_v24  ;;  %v437_v37 = vadd.f32 %v431_v30, %v419_v29  ;;  %v467_v38 = vmul.f32 0.22796702, %v461_v35  ;;  %v518_v42 = vmul.f32 0.052447528, %v512_v23  ;;  %v515_v47 = vld [vmem:[#allocation2 + $0x2e] sm:$0x3] }
  0xb9   : > { %v488_v41 = vadd.f32 %v482_v21, %v470_v33  ;;  %v485_v43 = vmul.f32 0.19362739, %v479_v36  ;;  %v418_v48 = vmul.f32 0.052447528, %v412_v44  ;;  %v430_v49 = vmul.f32 0.11864546, %v424_v45 }
  0xba   : > { %v1699_v40 = vadd.f32 %v519_v20, %v507_v32  ;;  %v455_v46 = vadd.f32 %v449_v31, %v437_v37  ;;  %v503_v51 = vmul.f32 0.11864546, %v497_v39  ;;  %v442_v52 = vld [vmem:[#allocation2 + $0x22] sm:$0xff]  ;;  %v521_v62 = vmul.f32 0.052447528, %v515_v47 }
  0xbb   : > { %v506_v50 = vadd.f32 %v500_v34, %v488_v41  ;;  %v460_v53 = vld [vmem:[#allocation2 + $0x23] sm:$0xff]  ;;  %v436_v56 = vadd.f32 %v430_v49, %v418_v48  ;;  %v448_v57 = vmul.f32 0.19362739, %v442_v52  ;;  %v534_v12 = vmul.f32 0.5204501, %v1695_v19 }
  0xbc   : > { %618 = vrot.lane.b32.xlu1 %v1699_v40, %s1382_s21  ;;  %v478_v54 = vld [vmem:[#allocation2 + $0x24] sm:$0xff]  ;;  %v473_v55 = vadd.f32 %v467_v38, %v455_v46  ;;  %v466_v58 = vmul.f32 0.22796702, %v460_v53  ;;  %v537_v13 = vmul.f32 0.5204501, %v1699_v40 }
  0xbd   : > { %v1703_v59 = vadd.f32 %v518_v42, %v506_v50  ;;  %v496_v60 = vld [vmem:[#allocation2 + $0x25] sm:$0xff]  ;;  %v454_v63 = vadd.f32 %v448_v57, %v436_v56  ;;  %v484_v1 = vmul.f32 0.19362739, %v478_v54  ;;  %v535_v14 = vmul.f32 0.5204501, %v1691_v0 }
  0xbe   : > { %v491_v61 = vadd.f32 %v485_v43, %v473_v55  ;;  %v514_v2 = vld [vmem:[#allocation2 + $0x26] sm:$0xff]  ;;  %v502_v5 = vmul.f32 0.11864546, %v496_v60  ;;  %v571_v17 = vmul.f32 0.84936583, %v1691_v0 }
  0xbf   : > { %616 = vrot.lane.b32.xlu0 %v1703_v59, %s1382_s21  ;;  %v472_v4 = vadd.f32 %v466_v58, %v454_v63  ;;  %v520_v8 = vmul.f32 0.052447528, %v514_v2  ;;  %v536_v10 = vmul.f32 0.5204501, %v1703_v59  ;;  %v570_v18 = vmul.f32 0.84936583, %v1695_v19 }
  0xc0   : > { %v509_v3 = vadd.f32 %v503_v51, %v491_v61  ;;  %v573_v20 = vmul.f32 0.84936583, %v1699_v40  ;;  %v572_v21 = vmul.f32 0.84936583, %v1703_v59  ;;  %v529_v24 = vmul.f32 0.2300663, %v1691_v0 }
  0xc1   : > { %v490_v7 = vadd.f32 %v484_v1, %v472_v4  ;;  %v528_v25 = vmul.f32 0.2300663, %v1695_v19  ;;  %v531_v26 = vmul.f32 0.2300663, %v1699_v40  ;;  %v530_v27 = vmul.f32 0.2300663, %v1703_v59 }
  0xc2   : > { %v527_v6 = vadd.f32 %v521_v62, %v509_v3 }
  0xc3   : > { %v508_v9 = vadd.f32 %v502_v5, %v490_v7 }
  0xc4   : > { %622 = vrot.lane.b32.xlu1 %v527_v6, %s1382_s21  ;;  %v539_v15 = vmul.f32 0.5204501, %v527_v6  ;;  %v575_v22 = vmul.f32 0.84936583, %v527_v6  ;;  %v533_v28 = vmul.f32 0.2300663, %v527_v6 }
  0xc5   : > { %v526_v11 = vadd.f32 %v520_v8, %v508_v9 }
  0xc7   : > { %620 = vrot.lane.b32.xlu0 %v526_v11, %s1382_s21  ;;  %v538_v16 = vmul.f32 0.5204501, %v526_v11  ;;  %v574_v23 = vmul.f32 0.84936583, %v526_v11  ;;  %v532_v29 = vmul.f32 0.2300663, %v526_v11 }
  0xc8   : > { %550 = vrot.lane.b32.xlu1 %v536_v10, %s1383_s27 }
  0xcb   : > { %546 = vrot.lane.b32.xlu0 %v534_v12, %s1383_s27 }
  0xcc   : > { %552 = vrot.lane.b32.xlu1 %v537_v13, %s1383_s27 }
  0xcf   : > { %548 = vrot.lane.b32.xlu0 %v535_v14, %s1383_s27 }
  0xd0   : > { %556 = vrot.lane.b32.xlu1 %v539_v15, %s1383_s27 }
  0xd3   : > { %554 = vrot.lane.b32.xlu0 %v538_v16, %s1383_s27 }
  0xd4   : > { %584 = vrot.lane.b32.xlu1 %v571_v17, %s1384_s19 }
  0xd7   : > { %582 = vrot.lane.b32.xlu0 %v570_v18, %s1384_s19 }
  0xd8   : > { %588 = vrot.lane.b32.xlu1 %v573_v20, %s1384_s19 }
  0xdb   : > { %586 = vrot.lane.b32.xlu0 %v572_v21, %s1384_s19 }
  0xdc   : > { %592 = vrot.lane.b32.xlu1 %v575_v22, %s1384_s19 }
  0xdf   : > { %590 = vrot.lane.b32.xlu0 %v574_v23, %s1384_s19 }
  0xe0   : > { %638 = vrot.lane.b32.xlu1 %v571_v17, %s1385_s23 }
  0xe3   : > { %636 = vrot.lane.b32.xlu0 %v570_v18, %s1385_s23 }
  0xe4   : > { %642 = vrot.lane.b32.xlu1 %v573_v20, %s1385_s23 }
  0xe7   : > { %640 = vrot.lane.b32.xlu0 %v572_v21, %s1385_s23 }
  0xe8   : > { %646 = vrot.lane.b32.xlu1 %v575_v22, %s1385_s23 }
  0xeb   : > { %644 = vrot.lane.b32.xlu0 %v574_v23, %s1385_s23 }
  0xec   : > { %662 = vrot.lane.b32.xlu1 %v535_v14, %s1386_s7 }
  0xef   : > { %660 = vrot.lane.b32.xlu0 %v534_v12, %s1386_s7 }
  0xf0   : > { %666 = vrot.lane.b32.xlu1 %v537_v13, %s1386_s7 }
  0xf3   : > { %664 = vrot.lane.b32.xlu0 %v536_v10, %s1386_s7 }
  0xf4   : > { %670 = vrot.lane.b32.xlu1 %v539_v15, %s1386_s7 }
  0xf7   : > { %668 = vrot.lane.b32.xlu0 %v538_v16, %s1386_s7 }
  0xf8   : > { %692 = vrot.lane.b32.xlu1 %v529_v24, %s1387_s22 }
  0xfb   : > { %690 = vrot.lane.b32.xlu0 %v528_v25, %s1387_s22 }
  0xfc   : > { %696 = vrot.lane.b32.xlu1 %v531_v26, %s1387_s22 }
  0xff   : > { %694 = vrot.lane.b32.xlu0 %v530_v27, %s1387_s22 }
 0x100   : > { %700 = vrot.lane.b32.xlu1 %v533_v28, %s1387_s22 }
 0x103   : > { %698 = vrot.lane.b32.xlu0 %v532_v29, %s1387_s22 }
 0x126   : > { %v615_v30 = vpop.permute.xlu1 %614 }
 0x129   : > { %v613_v31 = vpop.permute.xlu0 %612 }
 0x12e   : > { %v619_v32 = vpop.permute.xlu1 %618 }
 0x131   : > { %v617_v0 = vpop.permute.xlu0 %616 }
 0x136   : > { %v623_v33 = vpop.permute.xlu1 %622 }
 0x139   : > { %v621_v34 = vpop.permute.xlu0 %620 }
 0x13a   : > { %v551_v35 = vpop.permute.xlu1 %550 }
 0x13b   : > { %v566_v62 = vadd.f32 %v551_v35, %v530_v27 }
 0x13d   : > { %v547_v36 = vpop.permute.xlu0 %546 }
 0x13e   : > { %v553_v19 = vpop.permute.xlu1 %552  ;;  %v564_v57 = vadd.f32 %v547_v36, %v528_v25 }
 0x13f   : > { %v567_v58 = vadd.f32 %v553_v19, %v531_v26 }
 0x141   : > { %v549_v37 = vpop.permute.xlu0 %548 }
 0x142   : > { %v557_v38 = vpop.permute.xlu1 %556  ;;  %v565_v53 = vadd.f32 %v549_v37, %v529_v24 }
 0x143   : > { %v569_v2 = vadd.f32 %v557_v38, %v533_v28 }
 0x145   : > { %v555_v39 = vpop.permute.xlu0 %554 }
 0x146   : > { %v585_v40 = vpop.permute.xlu1 %584  ;;  %v568_v11 = vadd.f32 %v555_v39, %v532_v29 }
 0x147   : > { %v601_v54 = vadd.f32 %v585_v40, %v565_v53 }
 0x149   : > { %v583_v41 = vpop.permute.xlu0 %582  ;;  %v631_v61 = vadd.f32 %v615_v30, %v601_v54 }
 0x14a   : > { %v589_v42 = vpop.permute.xlu1 %588  ;;  %v600_v59 = vadd.f32 %v583_v41, %v564_v57 }
 0x14b   : > { %v603_v60 = vadd.f32 %v589_v42, %v567_v58 }
 0x14c   : > { %v630_v6 = vadd.f32 %v613_v31, %v600_v59 }
 0x14d   : > { %v587_v43 = vpop.permute.xlu0 %586  ;;  %v633_v7 = vadd.f32 %v619_v32, %v603_v60 }
 0x14e   : > { %v593_v44 = vpop.permute.xlu1 %592  ;;  %v602_v4 = vadd.f32 %v587_v43, %v566_v62 }
 0x14f   : > { %v605_v5 = vadd.f32 %v593_v44, %v569_v2 }
 0x150   : > { %v632_v15 = vadd.f32 %v617_v0, %v602_v4 }
 0x151   : > { %v591_v45 = vpop.permute.xlu0 %590  ;;  %v635_v17 = vadd.f32 %v623_v33, %v605_v5 }
 0x152   : > { %v639_v46 = vpop.permute.xlu1 %638  ;;  %v604_v16 = vadd.f32 %v591_v45, %v568_v11 }
 0x153   : > { %v655_v3 = vadd.f32 %v639_v46, %v631_v61 }
 0x154   : > { %v634_v27 = vadd.f32 %v621_v34, %v604_v16 }
 0x155   : > { %v637_v47 = vpop.permute.xlu0 %636 }
 0x156   : > { %v643_v48 = vpop.permute.xlu1 %642  ;;  %v654_v12 = vadd.f32 %v637_v47, %v630_v6 }
 0x157   : > { %v657_v13 = vadd.f32 %v643_v48, %v633_v7 }
 0x159   : > { %v641_v49 = vpop.permute.xlu0 %640 }
 0x15a   : > { %v647_v50 = vpop.permute.xlu1 %646  ;;  %v656_v23 = vadd.f32 %v641_v49, %v632_v15 }
 0x15b   : > { %v659_v24 = vadd.f32 %v647_v50, %v635_v17 }
 0x15d   : > { %v645_v51 = vpop.permute.xlu0 %644 }
 0x15e   : > { %v663_v52 = vpop.permute.xlu1 %662  ;;  %v658_v32 = vadd.f32 %v645_v51, %v634_v27 }
 0x15f   : > { %v679_v8 = vadd.f32 %v663_v52, %v655_v3 }
 0x161   : > { %v661_v55 = vpop.permute.xlu0 %660 }
 0x162   : > { %v667_v56 = vpop.permute.xlu1 %666  ;;  %v678_v18 = vadd.f32 %v661_v55, %v654_v12 }
 0x163   : > { %v681_v20 = vadd.f32 %v667_v56, %v657_v13 }
 0x165   : > { %v665_v63 = vpop.permute.xlu0 %664 }
 0x166   : > { %v671_v1 = vpop.permute.xlu1 %670  ;;  %v680_v28 = vadd.f32 %v665_v63, %v656_v23 }
 0x167   : > { %v683_v30 = vadd.f32 %v671_v1, %v659_v24 }
 0x169   : > { %v669_v9 = vpop.permute.xlu0 %668 }
 0x16a   : > { %v693_v10 = vpop.permute.xlu1 %692  ;;  %v682_v35 = vadd.f32 %v669_v9, %v658_v32 }
 0x16b   : > { %v709_v14 = vadd.f32 %v693_v10, %v679_v8 }
 0x16d   : > { %722 = vrot.lane.b32.xlu1 %v709_v14, %s1388_s12  ;;  %v691_v21 = vpop.permute.xlu0 %690  ;;  %v746_v54 = vrot.slane %v709_v14, 7 }
 0x16e   : > { %v697_v22 = vpop.permute.xlu1 %696  ;;  %v708_v25 = vadd.f32 %v691_v21, %v678_v18 }
 0x16f   : > { %v711_v26 = vadd.f32 %v697_v22, %v681_v20 }
 0x170   : > { %720 = vrot.lane.b32.xlu0 %v708_v25, %s1388_s12  ;;  %v745_v55 = vrot.slane %v708_v25, 7 }
 0x171   : > { %726 = vrot.lane.b32.xlu1 %v711_v26, %s1388_s12  ;;  %v695_v29 = vpop.permute.xlu0 %694  ;;  %v749_v56 = vrot.slane %v711_v26, 7 }
 0x172   : > { %v701_v31 = vpop.permute.xlu1 %700  ;;  %v710_v0 = vadd.f32 %v695_v29, %v680_v28  ;;  %v747_v58 = vsel %vm744_vm1, %v745_v55, %v746_v54  ;;  %v760_v62 = vsub.f32 %v708_v25, %v745_v55 }
 0x173   : > { %v713_v33 = vadd.f32 %v701_v31, %v683_v30  ;;  %v761_v59 = vsub.f32 %v709_v14, %v747_v58 }
 0x174   : > { %724 = vrot.lane.b32.xlu0 %v710_v0, %s1388_s12  ;;  %v748_v57 = vrot.slane %v710_v0, 7  ;;  %v802_v4 = vmul.f32 %v760_v62, %v760_v62 }
 0x175   : > { %730 = vrot.lane.b32.xlu1 %v713_v33, %s1388_s12  ;;  %v699_v36 = vpop.permute.xlu0 %698  ;;  %v752_v60 = vrot.slane %v713_v33, 7  ;;  %v803_v1 = vmul.f32 %v761_v59, %v761_v59 }
 0x176   : > { %v712_v19 = vadd.f32 %v699_v36, %v682_v35  ;;  %v750_v63 = vsel %vm744_vm1, %v748_v57, %v749_v56  ;;  %v762_v5 = vsub.f32 %v710_v0, %v748_v57  ;;  %v821_v13 = vrot.slane %v802_v4, 1 }
 0x177   : > { %v763_v2 = vsub.f32 %v711_v26, %v750_v63  ;;  %v822_v9 = vrot.slane %v803_v1, 1 }
 0x178   : > { %728 = vrot.lane.b32.xlu0 %v712_v19, %s1388_s12  ;;  %v751_v61 = vrot.slane %v712_v19, 7  ;;  %v804_v16 = vmul.f32 %v762_v5, %v762_v5 }
 0x179   : > { %v805_v10 = vmul.f32 %v763_v2, %v763_v2  ;;  %v823_v27 = vsel %vm820_vm2, %v821_v13, %v822_v9 }
 0x17a   : > { %v753_v6 = vsel %vm744_vm1, %v751_v61, %v752_v60 }
 0x17b   : > { %v765_v11 = vsub.f32 %v713_v33, %v753_v6  ;;  %v825_v23 = vrot.slane %v805_v10, 1 }
 0x17d   : > { %v807_v24 = vmul.f32 %v765_v11, %v765_v11 }
 0x17f   : > { %v828_v36 = vrot.slane %v807_v24, 1 }
 0x1df   : > { %v723_v37 = vpop.permute.xlu1 %722 }
 0x1e0   : > { %v739_v38 = vsub.f32 %v709_v14, %v723_v37  ;;  %v764_v14 = vsub.f32 %v712_v19, %v751_v61 }
 0x1e2   : > { %v767_v39 = vmul.f32 %v739_v38, %v739_v38  ;;  %v721_v40 = vpop.permute.xlu0 %720  ;;  %v806_v30 = vmul.f32 %v764_v14, %v764_v14 }
 0x1e3   : > { %v727_v34 = vpop.permute.xlu1 %726  ;;  %v738_v41 = vsub.f32 %v708_v25, %v721_v40  ;;  %v824_v25 = vrot.slane %v804_v16, 1 }
 0x1e4   : > { %v741_v42 = vsub.f32 %v711_v26, %v727_v34  ;;  %780 = vrot.lane.b32.xlu1 %v767_v39, %s1383_s27 }
 0x1e5   : > { %v766_v43 = vmul.f32 %v738_v41, %v738_v41  ;;  %v826_v38 = vsel %vm820_vm2, %v824_v25, %v825_v23 }
 0x1e6   : > { %v769_v44 = vmul.f32 %v741_v42, %v741_v42  ;;  %v725_v45 = vpop.permute.xlu0 %724 }
 0x1e7   : > { %v731_v46 = vpop.permute.xlu1 %730  ;;  %v740_v47 = vsub.f32 %v710_v0, %v725_v45  ;;  %778 = vrot.lane.b32.xlu0 %v766_v43, %s1383_s27 }
 0x1e8   : > { %v743_v48 = vsub.f32 %v713_v33, %v731_v46  ;;  %784 = vrot.lane.b32.xlu1 %v769_v44, %s1383_s27 }
 0x1e9   : > { %v768_v49 = vmul.f32 %v740_v47, %v740_v47 }
 0x1ea   : > { %v771_v50 = vmul.f32 %v743_v48, %v743_v48  ;;  %v729_v51 = vpop.permute.xlu0 %728 }
 0x1eb   : > { %v742_v52 = vsub.f32 %v712_v19, %v729_v51  ;;  %782 = vrot.lane.b32.xlu0 %v768_v49, %s1383_s27  ;;  %v827_v19 = vrot.slane %v806_v30, 1 }
 0x1ec   : > { %788 = vrot.lane.b32.xlu1 %v771_v50, %s1383_s27 }
 0x1ed   : > { %v770_v53 = vmul.f32 %v742_v52, %v742_v52  ;;  %v829_v42 = vsel %vm820_vm2, %v827_v19, %v828_v36 }
 0x1ef   : > { %786 = vrot.lane.b32.xlu0 %v770_v53, %s1383_s27 }
 0x256   : > { %v781_v3 = vpop.permute.xlu1 %780 }
 0x257   : > { %v797_v7 = vadd.f32 %v781_v3, %v767_v39 }
 0x259   : > { %v809_v8 = vadd.f32 %v803_v1, %v797_v7  ;;  %v779_v12 = vpop.permute.xlu0 %778 }
 0x25a   : > { %v785_v15 = vpop.permute.xlu1 %784  ;;  %v796_v17 = vadd.f32 %v779_v12, %v766_v43 }
 0x25b   : > { %v799_v18 = vadd.f32 %v785_v15, %v769_v44  ;;  %v837_v20 = vadd.f32 %v822_v9, %v809_v8 }
 0x25c   : > { %v808_v21 = vadd.f32 %v802_v4, %v796_v17 }
 0x25d   : > { %v811_v22 = vadd.f32 %v805_v10, %v799_v18  ;;  %850 = vrot.lane.b32.xlu1 %v837_v20, %s1383_s27  ;;  %v783_v26 = vpop.permute.xlu0 %782 }
 0x25e   : > { %v789_v28 = vpop.permute.xlu1 %788  ;;  %v798_v29 = vadd.f32 %v783_v26, %v768_v49  ;;  %v836_v31 = vadd.f32 %v823_v27, %v808_v21 }
 0x25f   : > { %v801_v32 = vadd.f32 %v789_v28, %v771_v50  ;;  %v839_v0 = vadd.f32 %v825_v23, %v811_v22 }
 0x260   : > { %v810_v33 = vadd.f32 %v804_v16, %v798_v29  ;;  %848 = vrot.lane.b32.xlu0 %v836_v31, %s1383_s27 }
 0x261   : > { %v813_v35 = vadd.f32 %v807_v24, %v801_v32  ;;  %854 = vrot.lane.b32.xlu1 %v839_v0, %s1383_s27  ;;  %v787_v37 = vpop.permute.xlu0 %786 }
 0x262   : > { %v800_v39 = vadd.f32 %v787_v37, %v770_v53  ;;  %v838_v40 = vadd.f32 %v826_v38, %v810_v33 }
 0x263   : > { %v841_v34 = vadd.f32 %v828_v36, %v813_v35 }
 0x264   : > { %v812_v41 = vadd.f32 %v806_v30, %v800_v39  ;;  %852 = vrot.lane.b32.xlu0 %v838_v40, %s1383_s27 }
 0x265   : > { %858 = vrot.lane.b32.xlu1 %v841_v34, %s1383_s27 }
 0x266   : > { %v840_v43 = vadd.f32 %v829_v42, %v812_v41 }
 0x268   : > { %856 = vrot.lane.b32.xlu0 %v840_v43, %s1383_s27 }
 0x2cf   : > { %v851_v44 = vpop.permute.xlu1 %850 }
 0x2d0   : > { %869 = vst.msk [vmem:[%s376_s1 + $0x7] sm:$0x1] %vm868_vm3, %v851_v44 }
 0x2d2   : > { %v849_v45 = vpop.permute.xlu0 %848 }
 0x2d3   : > { %v855_v46 = vpop.permute.xlu1 %854  ;;  %867 = vst.msk [vmem:[%s376_s1 - $0x1] sm:$0xfe] %vm866_vm4, %v849_v45 }
 0x2d4   : > { %871 = vst.msk [vmem:[%s376_s1 + $0xf] sm:$0x1] %vm868_vm3, %v855_v46 }
 0x2d6   : > { %v853_v47 = vpop.permute.xlu0 %852 }
 0x2d7   : > { %v859_v48 = vpop.permute.xlu1 %858  ;;  %870 = vst.msk [vmem:[%s376_s1 + $0x7] sm:$0xfe] %vm866_vm4, %v853_v47 }
 0x2d8   : > { %873 = vst.msk [vmem:[%s376_s1 + $0x17] sm:$0x1] %vm868_vm3, %v859_v48 }
 0x2da   : > { %v857_v49 = vpop.permute.xlu0 %856 }
 0x2db   : > { %872 = vst.msk [vmem:[%s376_s1 + $0xf] sm:$0xfe] %vm866_vm4, %v857_v49 }
 0x2dc   : > { %1296 = shalt.err (!%p1293_p5)
}
 0x2dd   : > { %s1297_s24 = scalar_lea.hbm %s1749_s11, 384  ;;  %s1301_s13 = scalar_lea.hbm %s1802_s4, 768 }
 0x2de   : > { %p1298_p1 = scmp.ne.s32.totalorder %s1749_s11, %s1297_s24  ;;  %p1302_p12 = scmp.lt.u32.totalorder %s1749_s11, %s1802_s4 }
 0x2df   : > { %p1303_p2 = scmp.lt.u32.totalorder %s1301_s13, %s1297_s24  ;;  %p1305_p0 = scmp.lt.u32.totalorder %s1297_s24, %s1749_s11 }
 0x2e0   : > { %p1299_p6 = pnand %p1298_p1, %p1834_p4 }
 0x2e1   : > { %p1304_p8 = por %p1303_p2, %p1302_p12 }
 0x2e2   : > { %p1300_p9 = pneg %p1299_p6 }
 0x2e3   : > { %p1306_p10 = por %p1305_p0, %p1304_p8 }
 0x2e5   : > { %p1307_p13 = pnand %p1306_p10, %p1300_p9 }
 0x2e7   : > { %1310 = shalt.err (!%p1307_p13)
}
 0x2e8   : > { %s1390_s19 = smov 128   ;;  %s1391_s23 = smov 8  }
 0x2e9   : > { %1080 = dma.vmem_to_hbm [thread:$0]  (%p1834_p4), %s1744_s6, 384, %s1749_s11, %s875_s8, %s1390_s19, %s1390_s19, %s1391_s23  }
 0x2ea PF: > { %s904_s7 = sand.u32 1, %s1353_s15   ;;  %p1835_p11 = scmp.ne.s32.totalorder %s1823_s30, 0 }
 0x2eb   : > { %p1836_p7 = scmp.ge.s32.totalorder %s1373_s20, 2  ;;  %s905_s22 = scalar_lea.sflag [#allocation5], %s904_s7 }
 0x2ed   : > { %p1096_p3 = pnand %p1836_p7, %p1835_p11 }
 0x2ef   : > { %1348 = dma.done.wait (!%p1096_p3), %s905_s22, 384  }
 0x2f0   : > { %1350 = vsyncadd (!%p1096_p3), %s905_s22, 4294966912  ;;  %s26_s20 = sadd.s32 1, %s1373_s20   ;;  %s1837_s12 = sld [smem:[#allocation16_spill]] }
 0x2f1   : > { %p23_p5 = scmp.ge.s32.totalorder %s26_s20, 4   ;;  %s1838_s17 = sld [smem:[#allocation19_spill]] }
 0x2f2   : > { %s1839_s18 = sld [smem:[#allocation17_spill]]  ;;  %s1840_s19 = sld [smem:[#allocation18_spill]] }
 0x2f3   : > { %s1841_s15 = smov %s1357_s16  ;;  %25 = sbr.rel (!%p23_p5) target bundleno = 13 (0xd), region = 118 }
 0x2f6   : > { %s1842_s16 = smov %s1837_s12 }
 0x2fa   :  { %910 = vsyncpa [#allocation4], 1 }
 0x2fb   :  { %912 = vsyncpa [#allocation4 + $0x1], 1 }
 0x2fc   :  { %913 = vsyncpa [#allocation7], 1 }
 0x2fd   :  { %915 = vsyncpa [#allocation7 + $0x1], 1 }
 0x2fe   :  { %916 = vsyncpa [#allocation10], 1 }
 0x2ff   :  { %918 = vsyncpa [#allocation10 + $0x1], 1 }
 0x300   :  { %919 = vsyncpa [#allocation5], 1 }
 0x301   :  { %921 = vsyncpa [#allocation5 + $0x1], 1 }

</bundles_post_ra>
